<compile_context>
chip_gen: v6e
topology: v6e:2x2x1
jax: 0.10.0
libtpu: 0.0.40
codegen_flags: <defaults>
</compile_context>

<pallas_src>
import jax
import jax.numpy as jnp
from jax.experimental import pallas as pl
from jax.experimental.pallas import tpu as pltpu


def _round_up(x, m):
    return ((x + m - 1) // m) * m


# ----------------------------------------------------------------------------
# Pallas kernel: whole CriticNetwork forward for one batch tile.
# ----------------------------------------------------------------------------
def critic_kernel(x_ref, wscal_ref, mconv_ref, wfc_ref, wout_ref, bout_ref,
                  out_ref, fc_ref):
    relu = lambda v: jnp.maximum(v, 0.0)

    n_fc = wscal_ref.shape[1]
    kc1 = mconv_ref.shape[0]                   # 2*S1 + a_dim + 1 (bias lane)
    ct = mconv_ref.shape[1]                    # n_conv * (2*L1 + Lc)
    seg = _round_up(n_fc, 128)                 # lane-aligned segment stride
    off_conv = 3 * seg
    off_one = off_conv + _round_up(ct, 128)

    # Zero the packed fc-input slab: padded lanes must be 0 (not stale VMEM)
    # because the matching wfc rows are zero and 0 * NaN would poison the dot.
    fc_ref[...] = jnp.zeros_like(fc_ref)

    x = x_ref[...]                             # [BT, XW] f32 activation slab

    # --- three Conv1d(1, n_conv, 4) branches: ONE block-diagonal MXU matmul
    #     (Toeplitz-expanded weights, bias folded via the constant-1 lane) ---
    x_conv = x[:, 0:kc1].astype(jnp.bfloat16)  # [xt | xd | xc | 1]
    conv = jnp.dot(x_conv, mconv_ref[...], preferred_element_type=jnp.float32)
    fc_ref[:, off_conv:off_conv + ct] = relu(conv)          # [t | d | c] flat

    # --- three Linear(1, n_fc) scalar branches: VPU broadcast mul+add (f32) ---
    sbit = x[:, kc1 + 0:kc1 + 1]               # bitrate  (ch 0, last step)
    sbuf = x[:, kc1 + 1:kc1 + 2]               # buffer   (ch 1, last step)
    sleft = x[:, kc1 + 2:kc1 + 3]              # leftChunk (ch 5, last step)
    fc_ref[:, 0 * seg:0 * seg + n_fc] = relu(sbit * wscal_ref[0:1, :] + wscal_ref[3:4, :])
    fc_ref[:, 1 * seg:1 * seg + n_fc] = relu(sbuf * wscal_ref[1:2, :] + wscal_ref[4:5, :])
    fc_ref[:, 2 * seg:2 * seg + n_fc] = relu(sleft * wscal_ref[2:3, :] + wscal_ref[5:6, :])

    # constant-1 lane that drives the fullyConnected bias row of wfc
    fc_ref[:, off_one:off_one + 1] = jnp.ones_like(sbit)

    # --- fullyConnected + ReLU: single MXU dot over the packed slab (bf16) ---
    fc_out = relu(jnp.dot(fc_ref[...].astype(jnp.bfloat16), wfc_ref[...],
                          preferred_element_type=jnp.float32))

    # --- outputLayer: lane-dense [BT, 128] store, critic value in lane 0 ---
    out_ref[...] = (jnp.dot(fc_out.astype(jnp.bfloat16), wout_ref[...],
                            preferred_element_type=jnp.float32) + bout_ref[...])


# ----------------------------------------------------------------------------
# One-time parameter prepack (run at init, NOT on every forward call).
# ----------------------------------------------------------------------------
def prepack_params(params, state_dim, a_dim):
    S1 = state_dim[1]
    n_conv = params["wt"].shape[0]
    n_fc = params["wbit"].shape[0]
    n_fc1 = params["wfc"].shape[0]
    L1 = S1 - 3
    Lc = a_dim - 3
    CT = n_conv * (2 * L1 + Lc)          # fused conv output width
    Kc = 2 * S1 + a_dim                  # fused conv input width (w/o bias lane)

    def toeplitz(w4, S, L):
        # w4: [n_conv, 4] taps -> M: [S, n_conv*L] so (x @ M)[b, c*L+l] = conv
        M = jnp.zeros((S, n_conv, L), jnp.float32)
        for l in range(L):
            M = M.at[l:l + 4, :, l].set(w4.T)
        return M.reshape(S, n_conv * L)

    # Block-diagonal conv weight, bias folded as an extra row (driven by the 1-lane).
    mconv = jnp.zeros((Kc + 1, CT), jnp.float32)
    mconv = mconv.at[0:S1, 0:n_conv * L1].set(toeplitz(params["wt"][:, 0, :], S1, L1))
    mconv = mconv.at[S1:2 * S1, n_conv * L1:2 * n_conv * L1].set(
        toeplitz(params["wd"][:, 0, :], S1, L1))
    mconv = mconv.at[2 * S1:Kc, 2 * n_conv * L1:CT].set(
        toeplitz(params["wc"][:, 0, :], a_dim, Lc))
    bconv = jnp.concatenate([jnp.repeat(params["bt"], L1),
                             jnp.repeat(params["bd"], L1),
                             jnp.repeat(params["bc"], Lc)])
    mconv = mconv.at[Kc, :].set(bconv)

    # Scalar Linear(1, n_fc): rows = [wbit, wbuf, wleft, bbit, bbuf, bleft] (f32, VPU path)
    wscal = jnp.stack([params["wbit"][:, 0], params["wbuf"][:, 0], params["wleft"][:, 0],
                       params["bbit"], params["bbuf"], params["bleft"]], axis=0)

    # Lane-aligned fc_in layout: [bit | buf | left | t,d,c | 1], offsets % 128 == 0.
    seg = _round_up(n_fc, 128)
    ct_pad = _round_up(CT, 128)
    off_conv = 3 * seg
    off_one = off_conv + ct_pad
    k_pad = _round_up(off_one + 1, 128)

    # fullyConnected weight: torch column order is [bit | buf | t | d | c | left];
    # rows of the packed matrix are placed at the kernel's fc_in lane offsets.
    Wfc = params["wfc"]
    o = 0
    w_bit = Wfc[:, o:o + n_fc]; o += n_fc
    w_buf = Wfc[:, o:o + n_fc]; o += n_fc
    w_tdc = Wfc[:, o:o + CT];   o += CT
    w_left = Wfc[:, o:o + n_fc]; o += n_fc
    assert o == Wfc.shape[1]
    wfc_packed = jnp.zeros((k_pad, n_fc1), jnp.float32)
    wfc_packed = wfc_packed.at[0 * seg:0 * seg + n_fc, :].set(w_bit.T)
    wfc_packed = wfc_packed.at[1 * seg:1 * seg + n_fc, :].set(w_buf.T)
    wfc_packed = wfc_packed.at[2 * seg:2 * seg + n_fc, :].set(w_left.T)
    wfc_packed = wfc_packed.at[off_conv:off_conv + CT, :].set(w_tdc.T)
    wfc_packed = wfc_packed.at[off_one, :].set(params["bfc"])

    # Output layer padded to a lane-dense 128-wide slab (result in lane 0).
    OUTW = 128
    wout_pad = jnp.zeros((n_fc1, OUTW), jnp.float32).at[:, 0].set(params["wout"][0, :])
    bout_pad = jnp.zeros((1, OUTW), jnp.float32).at[0, 0].set(params["bout"][0])

    return {
        "wscal": wscal.astype(jnp.float32),       # scalar branches stay f32 (VPU)
        "mconv": mconv.astype(jnp.bfloat16),      # MXU operands in bf16
        "wfc": wfc_packed.astype(jnp.bfloat16),
        "wout": wout_pad.astype(jnp.bfloat16),
        "bout": bout_pad.astype(jnp.float32),
    }


# ----------------------------------------------------------------------------
# Forward wrapper: input slicing only + pallas_call (batched grid).
# ----------------------------------------------------------------------------
def critic_forward(inputs, packed, *, block_batch=8):
    wscal, mconv, wfc = packed["wscal"], packed["mconv"], packed["wfc"]
    wout, bout = packed["wout"], packed["bout"]

    B, _, S1 = inputs.shape
    kc = mconv.shape[0] - 1
    a_dim = kc - 2 * S1
    k_pad = wfc.shape[0]
    OUTW = wout.shape[1]

    # Per-call glue: one activation slab  [xt | xd | xc | 1 | bitrate | buffer | leftChunk]
    x_slab = jnp.concatenate(
        [inputs[:, 2, :], inputs[:, 3, :], inputs[:, 4, :a_dim],
         jnp.ones((B, 1), jnp.float32),
         inputs[:, 0, -1:], inputs[:, 1, -1:], inputs[:, 5, -1:]],
        axis=1).astype(jnp.float32)

    BT = block_batch
    B_pad = _round_up(B, BT)
    if B_pad != B:
        x_slab = jnp.pad(x_slab, ((0, B_pad - B), (0, 0)))
    XW = x_slab.shape[1]

    out = pl.pallas_call(
        critic_kernel,
        out_shape=jax.ShapeDtypeStruct((B_pad, OUTW), jnp.float32),
        grid_spec=pltpu.PrefetchScalarGridSpec(
            num_scalar_prefetch=0,
            grid=(B_pad // BT,),
            in_specs=[
                pl.BlockSpec((BT, XW), lambda i: (i, 0)),
                pl.BlockSpec(wscal.shape, lambda i: (0, 0)),
                pl.BlockSpec(mconv.shape, lambda i: (0, 0)),
                pl.BlockSpec(wfc.shape, lambda i: (0, 0)),
                pl.BlockSpec(wout.shape, lambda i: (0, 0)),
                pl.BlockSpec(bout.shape, lambda i: (0, 0)),
            ],
            out_specs=pl.BlockSpec((BT, OUTW), lambda i: (i, 0)),
            scratch_shapes=[pltpu.VMEM((BT, k_pad), jnp.float32)],
        ),
        compiler_params=pltpu.CompilerParams(
            dimension_semantics=("parallel",)),
    )(x_slab, wscal, mconv, wfc, wout, bout)

    return out[:B, 0:1]


# ----------------------------------------------------------------------------
# Pure-JAX reference mirroring the PyTorch forward semantics exactly (f32).
# ----------------------------------------------------------------------------
def critic_reference(inputs, params, a_dim):
    relu = lambda v: jnp.maximum(v, 0.0)
    lin = lambda x, w, b: x @ w.T + b

    bitrate = relu(lin(inputs[:, 0:1, -1], params["wbit"], params["bbit"]))
    buffer_ = relu(lin(inputs[:, 1:2, -1], params["wbuf"], params["bbuf"]))
    left = relu(lin(inputs[:, 5:6, -1], params["wleft"], params["bleft"]))

    def conv1d(x, w, b):            # x: [B,1,S], w: [n_conv,1,4]
        S = x.shape[-1]
        L = S - 3
        cols = jnp.stack([x[:, 0, k:k + L] for k in range(4)], axis=-1)   # [B, L, 4]
        y = jnp.einsum("blk,ck->bcl", cols, w[:, 0, :]) + b[None, :, None]
        return relu(y)

    t = conv1d(inputs[:, 2:3, :], params["wt"], params["bt"])
    d = conv1d(inputs[:, 3:4, :], params["wd"], params["bd"])
    c = conv1d(inputs[:, 4:5, :a_dim], params["wc"], params["bc"])
    B = inputs.shape[0]
    fc_in = jnp.concatenate(
        [bitrate, buffer_, t.reshape(B, -1), d.reshape(B, -1), c.reshape(B, -1), left], axis=1)
    fc_out = relu(lin(fc_in, params["wfc"], params["bfc"]))
    return lin(fc_out, params["wout"], params["bout"])


# ----------------------------------------------------------------------------
# Deterministic parameter construction (synthetic; shapes from __init__).
# ----------------------------------------------------------------------------
def make_params(key, state_dim, a_dim, n_conv, n_fc, n_fc1):
    num_fc_input = 2 * n_conv * (state_dim[1] - 4 + 1) + 3 * n_fc + n_conv * (a_dim - 4 + 1)
    keys = jax.random.split(key, 16)
    n = lambda k, shape: (0.1 * jax.random.normal(k, shape)).astype(jnp.float32)
    return {
        "wt": n(keys[0], (n_conv, 1, 4)),   "bt": n(keys[1], (n_conv,)),
        "wd": n(keys[2], (n_conv, 1, 4)),   "bd": n(keys[3], (n_conv,)),
        "wc": n(keys[4], (n_conv, 1, 4)),   "bc": n(keys[5], (n_conv,)),
        "wbuf": n(keys[6], (n_fc, 1)),      "bbuf": n(keys[7], (n_fc,)),
        "wleft": n(keys[8], (n_fc, 1)),     "bleft": n(keys[9], (n_fc,)),
        "wbit": n(keys[10], (n_fc, 1)),     "bbit": n(keys[11], (n_fc,)),
        "wfc": n(keys[12], (n_fc1, num_fc_input)), "bfc": n(keys[13], (n_fc1,)),
        "wout": n(keys[14], (1, n_fc1)),    "bout": n(keys[15], (1,)),
    }


if __name__ == "__main__":
    # Small shapes consistent with the module: state_dim=(6, 8), a_dim=6.
    B = 4
    state_dim = (6, 8)
    a_dim = 6
    n_conv = n_fc = n_fc1 = 32

    key = jax.random.PRNGKey(0)
    k_in, k_par, k_in2 = jax.random.split(key, 3)
    inputs = jax.random.normal(k_in, (B,) + state_dim, dtype=jnp.float32)
    params = make_params(k_par, state_dim, a_dim, n_conv, n_fc, n_fc1)

    # One-time prepack (hoisted out of the per-call path).
    packed = prepack_params(params, state_dim, a_dim)

    fwd = jax.jit(critic_forward, static_argnames=("block_batch",))

    out = jax.block_until_ready(fwd(inputs, packed))
    ref = jax.block_until_ready(critic_reference(inputs, params, a_dim))
    assert out.shape == (B, 1), out.shape
    assert jnp.allclose(out, ref, atol=2e-2, rtol=2e-2), (out, ref)

    # Larger batch exercises the multi-step "parallel" grid over the batch dim.
    B2 = 64
    inputs2 = jax.random.normal(k_in2, (B2,) + state_dim, dtype=jnp.float32)
    out2 = jax.block_until_ready(fwd(inputs2, packed, block_batch=16))
    ref2 = jax.block_until_ready(critic_reference(inputs2, params, a_dim))
    assert out2.shape == (B2, 1), out2.shape
    assert jnp.allclose(out2, ref2, atol=2e-2, rtol=2e-2), (out2, ref2)

    print("KERNEL_OK")
</pallas_src>

<mosaic_0001>
module attributes {stable_mosaic.version = 11 : i64} {
  func.func @critic_kernel(%arg0: i32, %arg1: memref<8x26xf32, #tpu.memory_space<vmem>>, %arg2: memref<6x32xf32, #tpu.memory_space<vmem>>, %arg3: memref<23x416xbf16, #tpu.memory_space<vmem>>, %arg4: memref<1024x32xbf16, #tpu.memory_space<vmem>>, %arg5: memref<32x128xbf16, #tpu.memory_space<vmem>>, %arg6: memref<1x128xf32, #tpu.memory_space<vmem>>, %arg7: memref<8x128xf32, #tpu.memory_space<vmem>>, %arg8: memref<8x1024xf32, #tpu.memory_space<vmem>>) attributes {dimension_semantics = [#tpu.dimension_semantics<parallel>], iteration_bounds = array<i64: 1>, scalar_prefetch = 0 : i64, scratch_operands = 1 : i64, tpu.core_type = #tpu.core_type<tc>, window_params = [{transform_indices = @transform_0, window_bounds = array<i64: 8, 26>}, {pipeline_mode = #tpu.pipeline_mode<synchronous>, transform_indices = @transform_1, window_bounds = array<i64: 6, 32>}, {pipeline_mode = #tpu.pipeline_mode<synchronous>, transform_indices = @transform_2, window_bounds = array<i64: 23, 416>}, {pipeline_mode = #tpu.pipeline_mode<synchronous>, transform_indices = @transform_3, window_bounds = array<i64: 1024, 32>}, {pipeline_mode = #tpu.pipeline_mode<synchronous>, transform_indices = @transform_4, window_bounds = array<i64: 32, 128>}, {pipeline_mode = #tpu.pipeline_mode<synchronous>, transform_indices = @transform_5, window_bounds = array<i64: 1, 128>}, {transform_indices = @transform_6, window_bounds = array<i64: 8, 128>}]} {
    %cst = arith.constant 0.000000e+00 : f32
    %0 = vector.broadcast %cst : f32 to vector<8x1024xf32>
    %c0 = arith.constant 0 : index
    %c0_0 = arith.constant 0 : index
    %1 = vector.load %arg8[%c0, %c0_0] : memref<8x1024xf32, #tpu.memory_space<vmem>>, vector<8x1024xf32>
    tpu.vector_store %arg8[%c0, %c0_0], %0 {strides = array<i32>} : memref<8x1024xf32, #tpu.memory_space<vmem>>, vector<8x1024xf32>,
    %c0_1 = arith.constant 0 : index
    %c0_2 = arith.constant 0 : index
    %2 = vector.load %arg1[%c0_1, %c0_2] : memref<8x26xf32, #tpu.memory_space<vmem>>, vector<8x26xf32>
    %3 = vector.extract_strided_slice %2 {offsets = [0, 0], sizes = [8, 23], strides = [1, 1]} : vector<8x26xf32> to vector<8x23xf32>
    %4 = arith.truncf %3 : vector<8x23xf32> to vector<8x23xbf16>
    %c0_3 = arith.constant 0 : index
    %c0_4 = arith.constant 0 : index
    %5 = vector.load %arg3[%c0_3, %c0_4] : memref<23x416xbf16, #tpu.memory_space<vmem>>, vector<23x416xbf16>
    %cst_5 = arith.constant dense<0.000000e+00> : vector<8x416xf32>
    %6 = tpu.matmul %4, %5, %cst_5 {dimension_numbers = #tpu.dot_dimension_numbers<[1], [0], [0], [1], [0, 0, 1, 1], [], []>} : vector<8x23xbf16>, vector<23x416xbf16>, vector<8x416xf32> -> vector<8x416xf32>
    %cst_6 = arith.constant 0.000000e+00 : f32
    %7 = vector.broadcast %cst_6 : f32 to vector<8x416xf32>
    %8 = arith.maximumf %6, %7 : vector<8x416xf32>
    %c0_7 = arith.constant 0 : index
    %c384 = arith.constant 384 : index
    %9 = vector.load %arg8[%c0_7, %c384] : memref<8x1024xf32, #tpu.memory_space<vmem>>, vector<8x416xf32>
    tpu.vector_store %arg8[%c0_7, %c384], %8 {strides = array<i32>} : memref<8x1024xf32, #tpu.memory_space<vmem>>, vector<8x416xf32>,
    %10 = vector.extract_strided_slice %2 {offsets = [0, 23], sizes = [8, 1], strides = [1, 1]} : vector<8x26xf32> to vector<8x1xf32>
    %11 = vector.extract_strided_slice %2 {offsets = [0, 24], sizes = [8, 1], strides = [1, 1]} : vector<8x26xf32> to vector<8x1xf32>
    %12 = vector.extract_strided_slice %2 {offsets = [0, 25], sizes = [8, 1], strides = [1, 1]} : vector<8x26xf32> to vector<8x1xf32>
    %c0_8 = arith.constant 0 : index
    %c0_9 = arith.constant 0 : index
    %13 = vector.load %arg2[%c0_8, %c0_9] : memref<6x32xf32, #tpu.memory_space<vmem>>, vector<1x32xf32>
    %14 = vector.broadcast %10 : vector<8x1xf32> to vector<8x32xf32>
    %15 = vector.broadcast %13 : vector<1x32xf32> to vector<8x32xf32>
    %16 = arith.mulf %14, %15 : vector<8x32xf32>
    %c3 = arith.constant 3 : index
    %c0_10 = arith.constant 0 : index
    %17 = vector.load %arg2[%c3, %c0_10] : memref<6x32xf32, #tpu.memory_space<vmem>>, vector<1x32xf32>
    %18 = vector.broadcast %17 : vector<1x32xf32> to vector<8x32xf32>
    %19 = arith.addf %16, %18 : vector<8x32xf32>
    %cst_11 = arith.constant 0.000000e+00 : f32
    %20 = vector.broadcast %cst_11 : f32 to vector<8x32xf32>
    %21 = arith.maximumf %19, %20 : vector<8x32xf32>
    %c0_12 = arith.constant 0 : index
    %c0_13 = arith.constant 0 : index
    %22 = vector.load %arg8[%c0_12, %c0_13] : memref<8x1024xf32, #tpu.memory_space<vmem>>, vector<8x32xf32>
    tpu.vector_store %arg8[%c0_12, %c0_13], %21 {strides = array<i32>} : memref<8x1024xf32, #tpu.memory_space<vmem>>, vector<8x32xf32>,
    %c1 = arith.constant 1 : index
    %c0_14 = arith.constant 0 : index
    %23 = vector.load %arg2[%c1, %c0_14] : memref<6x32xf32, #tpu.memory_space<vmem>>, vector<1x32xf32>
    %24 = vector.broadcast %11 : vector<8x1xf32> to vector<8x32xf32>
    %25 = vector.broadcast %23 : vector<1x32xf32> to vector<8x32xf32>
    %26 = arith.mulf %24, %25 : vector<8x32xf32>
    %c4 = arith.constant 4 : index
    %c0_15 = arith.constant 0 : index
    %27 = vector.load %arg2[%c4, %c0_15] : memref<6x32xf32, #tpu.memory_space<vmem>>, vector<1x32xf32>
    %28 = vector.broadcast %27 : vector<1x32xf32> to vector<8x32xf32>
    %29 = arith.addf %26, %28 : vector<8x32xf32>
    %cst_16 = arith.constant 0.000000e+00 : f32
    %30 = vector.broadcast %cst_16 : f32 to vector<8x32xf32>
    %31 = arith.maximumf %29, %30 : vector<8x32xf32>
    %c0_17 = arith.constant 0 : index
    %c128 = arith.constant 128 : index
    %32 = vector.load %arg8[%c0_17, %c128] : memref<8x1024xf32, #tpu.memory_space<vmem>>, vector<8x32xf32>
    tpu.vector_store %arg8[%c0_17, %c128], %31 {strides = array<i32>} : memref<8x1024xf32, #tpu.memory_space<vmem>>, vector<8x32xf32>,
    %c2 = arith.constant 2 : index
    %c0_18 = arith.constant 0 : index
    %33 = vector.load %arg2[%c2, %c0_18] : memref<6x32xf32, #tpu.memory_space<vmem>>, vector<1x32xf32>
    %34 = vector.broadcast %12 : vector<8x1xf32> to vector<8x32xf32>
    %35 = vector.broadcast %33 : vector<1x32xf32> to vector<8x32xf32>
    %36 = arith.mulf %34, %35 : vector<8x32xf32>
    %c5 = arith.constant 5 : index
    %c0_19 = arith.constant 0 : index
    %37 = vector.load %arg2[%c5, %c0_19] : memref<6x32xf32, #tpu.memory_space<vmem>>, vector<1x32xf32>
    %38 = vector.broadcast %37 : vector<1x32xf32> to vector<8x32xf32>
    %39 = arith.addf %36, %38 : vector<8x32xf32>
    %cst_20 = arith.constant 0.000000e+00 : f32
    %40 = vector.broadcast %cst_20 : f32 to vector<8x32xf32>
    %41 = arith.maximumf %39, %40 : vector<8x32xf32>
    %c0_21 = arith.constant 0 : index
    %c256 = arith.constant 256 : index
    %42 = vector.load %arg8[%c0_21, %c256] : memref<8x1024xf32, #tpu.memory_space<vmem>>, vector<8x32xf32>
    tpu.vector_store %arg8[%c0_21, %c256], %41 {strides = array<i32>} : memref<8x1024xf32, #tpu.memory_space<vmem>>, vector<8x32xf32>,
    %cst_22 = arith.constant 1.000000e+00 : f32
    %43 = vector.broadcast %cst_22 : f32 to vector<8x1xf32>
    %c0_23 = arith.constant 0 : index
    %c896 = arith.constant 896 : index
    %44 = vector.load %arg8[%c0_23, %c896] : memref<8x1024xf32, #tpu.memory_space<vmem>>, vector<8x1xf32>
    tpu.vector_store %arg8[%c0_23, %c896], %43 {strides = array<i32>} : memref<8x1024xf32, #tpu.memory_space<vmem>>, vector<8x1xf32>,
    %c0_24 = arith.constant 0 : index
    %c0_25 = arith.constant 0 : index
    %45 = vector.load %arg8[%c0_24, %c0_25] : memref<8x1024xf32, #tpu.memory_space<vmem>>, vector<8x1024xf32>
    %46 = arith.truncf %45 : vector<8x1024xf32> to vector<8x1024xbf16>
    %c0_26 = arith.constant 0 : index
    %c0_27 = arith.constant 0 : index
    %47 = vector.load %arg4[%c0_26, %c0_27] : memref<1024x32xbf16, #tpu.memory_space<vmem>>, vector<1024x32xbf16>
    %cst_28 = arith.constant dense<0.000000e+00> : vector<8x32xf32>
    %48 = tpu.matmul %46, %47, %cst_28 {dimension_numbers = #tpu.dot_dimension_numbers<[1], [0], [0], [1], [0, 0, 1, 1], [], []>} : vector<8x1024xbf16>, vector<1024x32xbf16>, vector<8x32xf32> -> vector<8x32xf32>
    %cst_29 = arith.constant 0.000000e+00 : f32
    %49 = vector.broadcast %cst_29 : f32 to vector<8x32xf32>
    %50 = arith.maximumf %48, %49 : vector<8x32xf32>
    %51 = arith.truncf %50 : vector<8x32xf32> to vector<8x32xbf16>
    %c0_30 = arith.constant 0 : index
    %c0_31 = arith.constant 0 : index
    %52 = vector.load %arg5[%c0_30, %c0_31] : memref<32x128xbf16, #tpu.memory_space<vmem>>, vector<32x128xbf16>
    %cst_32 = arith.constant dense<0.000000e+00> : vector<8x128xf32>
    %53 = tpu.matmul %51, %52, %cst_32 {dimension_numbers = #tpu.dot_dimension_numbers<[1], [0], [0], [1], [0, 0, 1, 1], [], []>} : vector<8x32xbf16>, vector<32x128xbf16>, vector<8x128xf32> -> vector<8x128xf32>
    %c0_33 = arith.constant 0 : index
    %c0_34 = arith.constant 0 : index
    %54 = vector.load %arg6[%c0_33, %c0_34] : memref<1x128xf32, #tpu.memory_space<vmem>>, vector<1x128xf32>
    %55 = vector.broadcast %54 : vector<1x128xf32> to vector<8x128xf32>
    %56 = arith.addf %53, %55 : vector<8x128xf32>
    %c0_35 = arith.constant 0 : index
    %c0_36 = arith.constant 0 : index
    %57 = vector.load %arg7[%c0_35, %c0_36] : memref<8x128xf32, #tpu.memory_space<vmem>>, vector<8x128xf32>
    tpu.vector_store %arg7[%c0_35, %c0_36], %56 {strides = array<i32>} : memref<8x128xf32, #tpu.memory_space<vmem>>, vector<8x128xf32>,
    return
  }
  func.func @transform_0(%arg0: i32) -> (i32, i32) {
    %c0_i32 = arith.constant 0 : i32
    %c0_i32_0 = arith.constant 0 : i32
    return %arg0, %c0_i32 : i32, i32
  }
  func.func @transform_1(%arg0: i32) -> (i32, i32) {
    %c0_i32 = arith.constant 0 : i32
    %c0_i32_0 = arith.constant 0 : i32
    %c0_i32_1 = arith.constant 0 : i32
    return %c0_i32, %c0_i32_0 : i32, i32
  }
  func.func @transform_2(%arg0: i32) -> (i32, i32) {
    %c0_i32 = arith.constant 0 : i32
    %c0_i32_0 = arith.constant 0 : i32
    %c0_i32_1 = arith.constant 0 : i32
    return %c0_i32, %c0_i32_0 : i32, i32
  }
  func.func @transform_3(%arg0: i32) -> (i32, i32) {
    %c0_i32 = arith.constant 0 : i32
    %c0_i32_0 = arith.constant 0 : i32
    %c0_i32_1 = arith.constant 0 : i32
    return %c0_i32, %c0_i32_0 : i32, i32
  }
  func.func @transform_4(%arg0: i32) -> (i32, i32) {
    %c0_i32 = arith.constant 0 : i32
    %c0_i32_0 = arith.constant 0 : i32
    %c0_i32_1 = arith.constant 0 : i32
    return %c0_i32, %c0_i32_0 : i32, i32
  }
  func.func @transform_5(%arg0: i32) -> (i32, i32) {
    %c0_i32 = arith.constant 0 : i32
    %c0_i32_0 = arith.constant 0 : i32
    %c0_i32_1 = arith.constant 0 : i32
    return %c0_i32, %c0_i32_0 : i32, i32
  }
  func.func @transform_6(%arg0: i32) -> (i32, i32) {
    %c0_i32 = arith.constant 0 : i32
    %c0_i32_0 = arith.constant 0 : i32
    return %arg0, %c0_i32 : i32, i32
  }
}

</mosaic_0001>

<bundles_post_ra>
// kernel: critic_forward.1
= control target key start
LH: loop header
LB: loop body
LE: loop exit
PB: predicated region body
PF: predicated region fallthrough
CT: control target
= control target key end

     0   :  { %vm74_vm0 = vcmask 1042432   ;;  %vm75_vm1 = vcmask 1043456   ;;  %v1270_v1 = vmov 65535   ;;  %v1271_v4 = vmov 0   ;;  %s1569_s2 = inlined_call_operand.vmem [shape: bf16[23,416], index: 2, kind: input, shape index: {}]   ;;  %s1570_s0 = inlined_call_operand.vmem [shape: f32[8,26], index: 0, kind: input, shape index: {}]   ;;  %s1571_s3 = inlined_call_operand.vmem [shape: bf16[1024,32], index: 3, kind: input, shape index: {}]   ;;  %s1572_s1 = inlined_call_operand.vmem [shape: f32[6,32], index: 1, kind: input, shape index: {}]   ;;  %s1573_s4 = inlined_call_operand.vmem [shape: bf16[32,128], index: 4, kind: input, shape index: {}]   ;;  %s1574_s5 = inlined_call_operand.vmem [shape: f32[1,128], index: 5, kind: input, shape index: {}]   ;;  %s1575_s6 = inlined_call_operand.vmem [shape: f32[8,128], index: 6, kind: output, shape index: {}]  }
   0x1   :  { %v38_v0 = vld [vmem:[%s1569_s2 + $0x20] sm:$0xff]  ;;  %v76_v2 = vsel %vm74_vm0, 4294967295, %v1270_v1  ;;  %v39_v3 = vld [vmem:[%s1569_s2 + $0x28] sm:$0xff]  ;;  %122 = vmatprep.mubr.bf16.mxu0 %v1271_v4  ;;  %163 = vmatprep.mubr.bf16.mxu1 %v1271_v4  ;;  %v1272_v9 = vmov 24   ;;  %v1273_v17 = vmov 25   ;;  %v1274_v20 = vmov 0.0  }
   0x2   :  { %v1004_v5 = vcombine.high %v38_v0, %v38_v0  ;;  %v77_v6 = vsel %vm75_vm1, %v76_v2, 0  ;;  %v1003_v7 = vcombine.low %v38_v0, %v38_v0  ;;  %v1006_v8 = vcombine.high %v39_v3, %v39_v3  ;;  %1190 = vset.pattern.permute.xlu0 %v1272_v9  ;;  %v1198_v11 = vld [vmem:[%s1569_s2 + $0x4] ss:$16 sps:$4 sm:$0xff]   ;;  %v1201_v15 = vld [vmem:[%s1569_s2 + $0xc] ss:$16 sps:$4 sm:$0xff]   ;;  %1192 = vset.pattern.permute.xlu1 %v1273_v17 }
   0x3   :  { %v1005_v10 = vcombine.low %v39_v3, %v39_v3  ;;  %v32_v16 = vld [vmem:[%s1570_s0] sm:$0xff]  ;;  %25 = vst [vmem:[#allocation2 + $0x8] sm:$0xff] %v1274_v20  ;;  %24 = vst [vmem:[#allocation2] sm:$0xff] %v1274_v20  ;;  %v1203_v21 = vld [vmem:[%s1569_s2 + $0x8] ss:$16 sps:$4 sm:$0xff]   ;;  %v1275_v23 = vmov 23  }
   0x4   :  { %v82_v12 = vand.u32 %v1004_v5, %v77_v6  ;;  %v79_v13 = vand.u32 %v1003_v7, %v77_v6  ;;  %v88_v14 = vand.u32 %v1006_v8, %v77_v6  ;;  %v1200_v19 = vld [vmem:[%s1569_s2] ss:$16 sps:$4 sm:$0xff]   ;;  %202 = vperm.xlu0 %1190, %v32_v16   ;;  %220 = vperm.xlu1 %1192, %v32_v16   ;;  %v1204_v22 = vld [vmem:[%s1571_s3 + $0x78] sm:$0xff]   ;;  %vm70_vm2 = vcmask 187392   ;;  %v1208_v28 = vld [vmem:[%s1571_s3 + $0x68] sm:$0xff]  }
   0x5   :  { %v85_v18 = vand.u32 %v1005_v10, %v77_v6  ;;  %26 = vst [vmem:[#allocation2 + $0x10] sm:$0xff] %v1274_v20  ;;  %30 = vst [vmem:[#allocation2 + $0x30] sm:$0xff] %v1274_v20  ;;  %v33_v24 = vpack.c.bf16 %v32_v16, %v32_v16  ;;  %v1205_v25 = vld [vmem:[%s1571_s3 + $0x38] sm:$0xff]   ;;  %v1206_v26 = vld [vmem:[%s1571_s3 + $0x70] sm:$0xff]   ;;  %vm236_vm3 = vcmask 7168   ;;  %v1276_v58 = vmov 1.0  }
   0x6   :  { %31 = vst [vmem:[#allocation2 + $0x38] sm:$0xff] %v1274_v20  ;;  %102 = vmatprep.subr.bf16.mxu0 %v82_v12  ;;  %143 = vmatprep.subr.bf16.mxu1 %v88_v14  ;;  %v1207_v27 = vld [vmem:[%s1571_s3 + $0x30] sm:$0xff]   ;;  %v1209_v29 = vld [vmem:[%s1571_s3 + $0x28] sm:$0xff]   ;;  %v1210_v30 = vld [vmem:[%s1571_s3 + $0x60] sm:$0xff]   ;;  %vm179_vm4 = vcmask 261120   ;;  %vm1277_vm5 = vmmov 0  }
   0x7   :  { %103 = vmatpush1.bf16.msra.mxu0 %v79_v13  ;;  %144 = vmatpush1.bf16.msra.mxu1 %v85_v18  ;;  %v1211_v31 = vld [vmem:[%s1571_s3 + $0x20] sm:$0xff]   ;;  %v1220_v32 = vld [vmem:[%s1571_s3 + $0xf8] sm:$0xff]   ;;  %v1224_v36 = vld [vmem:[%s1571_s3 + $0xf0] sm:$0xff]   ;;  %237 = vst.msk [vmem:[#allocation2 + $0x38] sm:$0xff] %vm236_vm3, %v1276_v58 }
   0x8   :  { %104 = vmatprep.subr.bf16.mxu0 %v1198_v11  ;;  %145 = vmatprep.subr.bf16.mxu1 %v1201_v15  ;;  %v1221_v33 = vld [vmem:[%s1571_s3 + $0xb8] sm:$0xff]   ;;  %v1225_v37 = vld [vmem:[%s1571_s3 + $0xb0] sm:$0xff]   ;;  %v1228_v40 = vld [vmem:[%s1571_s3 + $0xe8] sm:$0xff]  }
   0x9   :  { %1191 = vset.pattern.permute.xlu0 %v1275_v23  ;;  %v1212_v34 = vld [vmem:[%s1571_s3 + $0x58] sm:$0xff]   ;;  %v1214_v38 = vld [vmem:[%s1571_s3 + $0x50] sm:$0xff]   ;;  %v1229_v41 = vld [vmem:[%s1571_s3 + $0xa8] sm:$0xff]  }
   0xa   :  { %184 = vperm.xlu0 %1191, %v32_v16   ;;  %v1213_v35 = vld [vmem:[%s1571_s3 + $0x18] sm:$0xff]   ;;  %v1215_v39 = vld [vmem:[%s1571_s3 + $0x10] sm:$0xff]   ;;  %v1216_v42 = vld [vmem:[%s1571_s3 + $0x48] sm:$0xff]  }
   0xb   :  { %105 = vmatpush1.bf16.msra.mxu0 %v1200_v19  ;;  %146 = vmatpush1.bf16.msra.mxu1 %v1203_v21  ;;  %v1217_v43 = vld [vmem:[%s1571_s3 + $0x8] sm:$0xff]   ;;  %v1232_v44 = vld [vmem:[%s1571_s3 + $0xe0] sm:$0xff]   ;;  %v1222_v48 = vld [vmem:[%s1571_s3 + $0x178] sm:$0xff]  }
   0xc   :  { %1083 = vmatprep.subr.bf16.mxu0 %v1204_v22  ;;  %1105 = vmatprep.subr.bf16.mxu1 %v1220_v32  ;;  %v1233_v45 = vld [vmem:[%s1571_s3 + $0xa0] sm:$0xff]   ;;  %v1236_v49 = vld [vmem:[%s1571_s3 + $0xd8] sm:$0xff]   ;;  %v1240_v51 = vld [vmem:[%s1571_s3 + $0xd0] sm:$0xff]  }
   0xd   :  { %v1218_v46 = vld [vmem:[%s1571_s3 + $0x40] sm:$0xff]   ;;  %v1237_v50 = vld [vmem:[%s1571_s3 + $0x98] sm:$0xff]   ;;  %v1241_v52 = vld [vmem:[%s1571_s3 + $0x90] sm:$0xff]  }
   0xe   :  { %1007 = vmatmul.mubr.msk.bf16.vlgmr.msra.gmra.mxu0 %vm70_vm2, %v33_v24  ;;  %1008 = vmatmul.mubr.msk.bf16.vlgmr.msra.gmra.mxu1 %vm70_vm2, %v33_v24  ;;  %v1219_v47 = vld [vmem:[%s1571_s3] sm:$0xff]   ;;  %v1244_v53 = vld [vmem:[%s1571_s3 + $0xc8] sm:$0xff]   ;;  %v1252_v57 = vld [vmem:[%s1571_s3 + $0x1f8] sm:$0xff]  }
   0xf   :  { %1084 = vmatpush3.bf16.msra.mxu0 %v1205_v25  ;;  %1193 = vset.pattern.permute.xlu0 %v1273_v17  ;;  %v1245_v54 = vld [vmem:[%s1571_s3 + $0x88] sm:$0xff]   ;;  %v1248_v55 = vld [vmem:[%s1571_s3 + $0xc0] sm:$0xff]   ;;  %v1223_v16 = vld [vmem:[%s1571_s3 + $0x138] sm:$0xff]  }
  0x10   :  { %1085 = vmatprep.subr.bf16.mxu0 %v1206_v26  ;;  %1106 = vmatpush3.bf16.msra.mxu1 %v1221_v33  ;;  %v1249_v56 = vld [vmem:[%s1571_s3 + $0x80] sm:$0xff]   ;;  %v1226_v18 = vld [vmem:[%s1571_s3 + $0x170] sm:$0xff]   ;;  %v1230_v21 = vld [vmem:[%s1571_s3 + $0x168] sm:$0xff]  }
  0x11   :  { %1107 = vmatprep.subr.bf16.mxu1 %v1224_v36  ;;  %v1011_v59 = vld [vmem:[%s1572_s1 + $0x1] ss:$0 sm:$0xff]  ;;  %v1013_v60 = vld [vmem:[%s1572_s1 + $0x2] ss:$0 sm:$0xff]  ;;  %v1012_v61 = vld [vmem:[%s1572_s1 + $0x4] ss:$0 sm:$0xff] }
  0x12   :  { %v1014_v63 = vld [vmem:[%s1572_s1 + $0x5] ss:$0 sm:$0xff]  ;;  %v1009_v4 = vld [vmem:[%s1572_s1] ss:$0 sm:$0xff]  ;;  %v1010_v7 = vld [vmem:[%s1572_s1 + $0x3] ss:$0 sm:$0xff] }
  0x13   :  { %1086 = vmatpush3.bf16.msra.mxu0 %v1207_v27  ;;  %v1227_v19 = vld [vmem:[%s1571_s3 + $0x130] sm:$0xff]   ;;  %v1231_v22 = vld [vmem:[%s1571_s3 + $0x128] sm:$0xff]   ;;  %v1234_v23 = vld [vmem:[%s1571_s3 + $0x160] sm:$0xff]  }
  0x14   :  { %1087 = vmatprep.subr.bf16.mxu0 %v1208_v28  ;;  %1108 = vmatpush3.bf16.msra.mxu1 %v1225_v37  ;;  %v1235_v24 = vld [vmem:[%s1571_s3 + $0x120] sm:$0xff]   ;;  %v1238_v25 = vld [vmem:[%s1571_s3 + $0x158] sm:$0xff]   ;;  %v1242_v27 = vld [vmem:[%s1571_s3 + $0x150] sm:$0xff]  }
  0x15   :  { %1109 = vmatprep.subr.bf16.mxu1 %v1228_v40  ;;  %v1239_v26 = vld [vmem:[%s1571_s3 + $0x118] sm:$0xff]   ;;  %v1243_v28 = vld [vmem:[%s1571_s3 + $0x110] sm:$0xff]   ;;  %v1251_v32 = vld [vmem:[%s1571_s3 + $0x100] sm:$0xff]  }
  0x16   :  { %v1259_v58 = vld [vmem:[%s1571_s3 + $0x1a0] sm:$0xff]  }
  0x17   :  { %1088 = vmatpush3.bf16.msra.mxu0 %v1209_v29  ;;  %v1246_v29 = vld [vmem:[%s1571_s3 + $0x148] sm:$0xff]  }
  0x18   :  { %1089 = vmatprep.subr.bf16.mxu0 %v1210_v30  ;;  %1110 = vmatpush3.bf16.msra.mxu1 %v1229_v41  ;;  %v1247_v30 = vld [vmem:[%s1571_s3 + $0x108] sm:$0xff]  }
  0x19   :  { %1111 = vmatprep.subr.bf16.mxu1 %v1232_v44 }
  0x1b   :  { %1090 = vmatpush3.bf16.msra.mxu0 %v1211_v31  ;;  %v1250_v31 = vld [vmem:[%s1571_s3 + $0x140] sm:$0xff]  }
  0x1c   :  { %1091 = vmatprep.subr.bf16.mxu0 %v1212_v34  ;;  %1112 = vmatpush3.bf16.msra.mxu1 %v1233_v45  ;;  %v1253_v45 = vld [vmem:[%s1571_s3 + $0x1b8] sm:$0xff]  }
  0x1d   :  { %1113 = vmatprep.subr.bf16.mxu1 %v1236_v49 }
  0x1f   :  { %1092 = vmatpush3.bf16.msra.mxu0 %v1213_v35 }
  0x20   :  { %1093 = vmatprep.subr.bf16.mxu0 %v1214_v38  ;;  %1114 = vmatpush3.bf16.msra.mxu1 %v1237_v50  ;;  %v245_v38 = vld [vmem:[#allocation2 + $0x38] sm:$0xff] }
  0x21   :  { %1115 = vmatprep.subr.bf16.mxu1 %v1240_v51  ;;  %v253_v50 = vpack.c.bf16 %v245_v38, %v245_v38 }
  0x23   :  { %1094 = vmatpush3.bf16.msra.mxu0 %v1215_v39 }
  0x24   :  { %1095 = vmatprep.subr.bf16.mxu0 %v1216_v42  ;;  %1116 = vmatpush3.bf16.msra.mxu1 %v1241_v52 }
  0x25   :  { %1117 = vmatprep.subr.bf16.mxu1 %v1244_v53 }
  0x27   :  { %1096 = vmatpush3.bf16.msra.mxu0 %v1217_v43 }
  0x28   :  { %1097 = vmatprep.subr.bf16.mxu0 %v1218_v46  ;;  %1118 = vmatpush3.bf16.msra.mxu1 %v1245_v54  ;;  %v1255_v54 = vld [vmem:[%s1571_s3 + $0x1b0] sm:$0xff]  }
  0x29   :  { %1119 = vmatprep.subr.bf16.mxu1 %v1248_v55  ;;  %v1256_v55 = vld [vmem:[%s1571_s3 + $0x1e8] sm:$0xff]  }
  0x2b   :  { %1098 = vmatpush3.bf16.msra.mxu0 %v1219_v47 }
  0x2c   :  { %1127 = vmatprep.subr.bf16.mxu0 %v1222_v48  ;;  %1120 = vmatpush3.bf16.msra.mxu1 %v1249_v56  ;;  %v1254_v48 = vld [vmem:[%s1571_s3 + $0x1f0] sm:$0xff]   ;;  %v1257_v56 = vld [vmem:[%s1571_s3 + $0x1a8] sm:$0xff]  }
  0x2d   :  { %1149 = vmatprep.subr.bf16.mxu1 %v1252_v57  ;;  %v1258_v57 = vld [vmem:[%s1571_s3 + $0x1e0] sm:$0xff]  }
  0x7f   :  { %v203_v62 = vpop.permute.xlu0 %202  ;;  %v221_v0 = vpop.permute.xlu1 %220 }
  0x80   :  { %v209_v1 = vmul.f32 %v1011_v59, %v203_v62  ;;  %v227_v2 = vmul.f32 %v1013_v60, %v221_v0  ;;  %v1260_v59 = vld [vmem:[%s1571_s3 + $0x1d8] sm:$0xff]   ;;  %v1263_v62 = vld [vmem:[%s1571_s3 + $0x190] sm:$0xff]   ;;  %v1265_v0 = vld [vmem:[%s1571_s3 + $0x188] sm:$0xff]  }
  0x81   :  { %v1261_v60 = vld [vmem:[%s1571_s3 + $0x198] sm:$0xff]  }
  0x82   :  { %v215_v3 = vadd.f32 %v1012_v61, %v209_v1  ;;  %v233_v5 = vadd.f32 %v1014_v63, %v227_v2  ;;  %v1262_v61 = vld [vmem:[%s1571_s3 + $0x1d0] sm:$0xff]   ;;  %v1264_v63 = vld [vmem:[%s1571_s3 + $0x1c8] sm:$0xff]   ;;  %v1266_v1 = vld [vmem:[%s1571_s3 + $0x1c0] sm:$0xff]  }
  0x83   :  { %v1267_v2 = vld [vmem:[%s1571_s3 + $0x180] sm:$0xff]  }
  0x84   :  { %v216_v6 = vmax.f32 %v215_v3, 0.0  ;;  %v234_v9 = vmax.f32 %v233_v5, 0.0  ;;  %v1268_v5 = vld [vmem:[%s1573_s4 + $0x8] sm:$0xff]  }
  0x85   :  { %v185_v8 = vpop.permute.xlu0 %184 }
  0x86   :  { %v191_v10 = vmul.f32 %v1009_v4, %v185_v8  ;;  %217 = vst.msk [vmem:[#allocation2 + $0x8] sm:$0xff] %vm179_vm4, %v216_v6  ;;  %235 = vst.msk [vmem:[#allocation2 + $0x10] sm:$0xff] %vm179_vm4, %v234_v9  ;;  %v1269_v6 = vld [vmem:[%s1573_s4] sm:$0xff]  }
  0x88   :  { %v197_v11 = vadd.f32 %v1010_v7, %v191_v10 }
  0x8a   :  { %v198_v12 = vmax.f32 %v197_v11, 0.0 }
  0x8c   :  { %199 = vst.msk [vmem:[#allocation2] sm:$0xff] %vm179_vm4, %v198_v12 }
  0x8d   :  { %v239_v13 = vld [vmem:[#allocation2 + $0x8] sm:$0xff]  ;;  %v240_v33 = vld [vmem:[#allocation2 + $0x10] sm:$0xff] }
  0x8e   :  { %v247_v14 = vpack.c.bf16 %v239_v13, %v239_v13  ;;  %v248_v40 = vpack.c.bf16 %v240_v33, %v240_v33 }
  0x90   :  { %798 = vmatprep.mubr.bf16.mxu0 %v247_v14 }
  0x93   :  { %v238_v15 = vld [vmem:[#allocation2] sm:$0xff] }
  0x94   :  { %v246_v17 = vpack.c.bf16 %v238_v15, %v238_v15 }
  0x96   :  { %799 = vmatmul.mubr.bf16.vlgmr.msra.gmra.mxu0 %v246_v17 }
  0x97   :  { %1128 = vmatpush3.bf16.msra.mxu0 %v1223_v16 }
  0x98   :  { %1129 = vmatprep.subr.bf16.mxu0 %v1226_v18 }
  0x9b   :  { %1130 = vmatpush3.bf16.msra.mxu0 %v1227_v19 }
  0x9c   :  { %1131 = vmatprep.subr.bf16.mxu0 %v1230_v21 }
  0x9f   :  { %1132 = vmatpush3.bf16.msra.mxu0 %v1231_v22 }
  0xa0   :  { %1133 = vmatprep.subr.bf16.mxu0 %v1234_v23 }
  0xa3   :  { %1134 = vmatpush3.bf16.msra.mxu0 %v1235_v24 }
  0xa4   :  { %1135 = vmatprep.subr.bf16.mxu0 %v1238_v25 }
  0xa7   :  { %1136 = vmatpush3.bf16.msra.mxu0 %v1239_v26 }
  0xa8   :  { %1137 = vmatprep.subr.bf16.mxu0 %v1242_v27 }
  0xab   :  { %1138 = vmatpush3.bf16.msra.mxu0 %v1243_v28 }
  0xac   :  { %1139 = vmatprep.subr.bf16.mxu0 %v1246_v29 }
  0xaf   :  { %1140 = vmatpush3.bf16.msra.mxu0 %v1247_v30 }
  0xb0   :  { %1141 = vmatprep.subr.bf16.mxu0 %v1250_v31 }
  0xb3   :  { %1142 = vmatpush3.bf16.msra.mxu0 %v1251_v32  ;;  %v1079_v32 = vld [vmem:[%s1574_s5] ss:$0 sm:$0xff] }
  0xb4   :  { %1174 = vmatprep.subr.bf16.mxu0 %v1274_v20 }
  0xce   :  { %v124_v34 = vpop.f32.mrf.mxu0  ;;  %v165_v35 = vpop.f32.mrf.mxu1 }
  0xcf   :  { %v172_v36 = vmax.f32 %v124_v34, 0.0  ;;  %v174_v37 = vmax.f32 %v165_v35, 0.0 }
  0xd0   :  { %v126_v39 = vpop.f32.mrf.mxu0  ;;  %v167_v41 = vpop.f32.mrf.mxu1 }
  0xd1   :  { %v173_v42 = vmax.f32 %v126_v39, 0.0  ;;  %v249_v43 = vpack.c.bf16 %v172_v36, %v172_v36  ;;  %v251_v44 = vpack.c.bf16 %v174_v37, %v174_v37  ;;  %v175_v46 = vmax.f32 %v167_v41, 0.0 }
  0xd2   :  { %v128_v47 = vpop.f32.mrf.mxu0  ;;  %v169_v49 = vpop.f32.mrf.mxu1 }
  0xd3   :  { %838 = vmatprep.mubr.bf16.mxu1 %v249_v43  ;;  %878 = vmatprep.mubr.bf16.mxu0 %v251_v44  ;;  %v250_v51 = vpack.c.bf16 %v173_v42, %v173_v42  ;;  %180 = vst.msk [vmem:[#allocation2 + $0x30] sm:$0xff] %vm179_vm4, %v175_v46 }
  0xd4   :  { %v129_v52 = vpop.f32.mrf.mxu0  ;;  %839 = vmatmul.mubr.bf16.vlgmr.msra.gmra.mxu1 %v248_v40  ;;  %v170_v53 = vpop.f32.mrf.mxu1 }
  0xd5   :  { %1150 = vmatpush3.bf16.msra.mxu1 %v1253_v45  ;;  %879 = vmatmul.mubr.bf16.vlgmr.msra.gmra.mxu0 %v250_v51 }
  0xd6   :  { %1151 = vmatprep.subr.bf16.mxu1 %v1254_v48  ;;  %918 = vmatprep.mubr.bf16.mxu1 %v253_v50 }
  0xd7   :  { %1175 = vmatpush3.bf16.msra.mxu0 %v1268_v5  ;;  %1178 = vmatprep.mubr.msk.bf16.mxu0 %vm1277_vm5, %v1274_v20 }
  0xd8   :  { %1176 = vmatprep.subr.bf16.mxu0 %v1274_v20 }
  0xd9   :  { %1152 = vmatpush3.bf16.msra.mxu1 %v1255_v54 }
  0xda   :  { %1153 = vmatprep.subr.bf16.mxu1 %v1256_v55  ;;  %v244_v3 = vld [vmem:[#allocation2 + $0x30] sm:$0xff] }
  0xdb   :  { %v252_v4 = vpack.c.bf16 %v244_v3, %v244_v3  ;;  %1177 = vmatpush3.bf16.msra.mxu0 %v1269_v6 }
  0xdd   :  { %1154 = vmatpush3.bf16.msra.mxu1 %v1257_v56 }
  0xde   :  { %1155 = vmatprep.subr.bf16.mxu1 %v1258_v57 }
  0xe1   :  { %1156 = vmatpush3.bf16.msra.mxu1 %v1259_v58 }
  0xe2   :  { %1157 = vmatprep.subr.bf16.mxu1 %v1260_v59 }
  0xe5   :  { %1158 = vmatpush3.bf16.msra.mxu1 %v1261_v60 }
  0xe6   :  { %1159 = vmatprep.subr.bf16.mxu1 %v1262_v61 }
  0xe9   :  { %1160 = vmatpush3.bf16.msra.mxu1 %v1263_v62 }
  0xea   :  { %1161 = vmatprep.subr.bf16.mxu1 %v1264_v63 }
  0xed   :  { %1162 = vmatpush3.bf16.msra.mxu1 %v1265_v0 }
  0xee   :  { %1163 = vmatprep.subr.bf16.mxu1 %v1266_v1 }
  0xf1   :  { %1164 = vmatpush3.bf16.msra.mxu1 %v1267_v2 }
  0xf4   :  { %919 = vmatmul.mubr.bf16.vlgmr.msra.gmra.mxu1 %v252_v4 }
 0x156   :  { %v1099_v7 = vpop.f32.mrf.mxu0 }
 0x158   :  { %v1100_v8 = vpop.f32.mrf.mxu0 }
 0x159   :  { %v1101_v9 = vadd.f32 %v1100_v8, %v1099_v7 }
 0x15a   :  { %v1102_v10 = vpop.f32.mrf.mxu0 }
 0x15c   :  { %v1103_v11 = vpop.f32.mrf.mxu0 }
 0x194   :  { %v1121_v12 = vpop.f32.mrf.mxu1 }
 0x195   :  { %v1143_v13 = vpop.f32.mrf.mxu0 }
 0x196   :  { %v1122_v14 = vpop.f32.mrf.mxu1 }
 0x197   :  { %v1144_v15 = vpop.f32.mrf.mxu0  ;;  %v1123_v21 = vadd.f32 %v1122_v14, %v1121_v12 }
 0x198   :  { %v1124_v16 = vpop.f32.mrf.mxu1  ;;  %v1145_v23 = vadd.f32 %v1144_v15, %v1143_v13 }
 0x199   :  { %v1146_v17 = vpop.f32.mrf.mxu0  ;;  %v841_v22 = vadd.f32 %v1123_v21, %v1101_v9 }
 0x19a   :  { %v1125_v18 = vpop.f32.mrf.mxu1 }
 0x19b   :  { %v1147_v19 = vpop.f32.mrf.mxu0  ;;  %v881_v26 = vadd.f32 %v1145_v23, %v841_v22 }
 0x1b4   :  { %v1165_v24 = vpop.f32.mrf.mxu1 }
 0x1b6   :  { %v1166_v25 = vpop.f32.mrf.mxu1 }
 0x1b7   :  { %v1167_v20 = vadd.f32 %v1166_v25, %v1165_v24 }
 0x1b8   :  { %v1168_v27 = vpop.f32.mrf.mxu1 }
 0x1b9   :  { %v921_v28 = vadd.f32 %v1167_v20, %v881_v26 }
 0x1ba   :  { %v1169_v29 = vpop.f32.mrf.mxu1 }
 0x1bb   :  { %v926_v30 = vmax.f32 %v921_v28, 0.0 }
 0x1bd   :  { %v927_v31 = vpack.c.bf16 %v926_v30, %v926_v30 }
 0x1bf   :  { %1179 = vmatmul.mubr.msk.bf16.vlgmr.msra.gmra.mxu0 %vm179_vm4, %v927_v31 }
 0x27f   :  { %v988_v33 = vpop.f32.mrf.mxu0 }
 0x280   :  { %v989_v34 = vadd.f32 %v1079_v32, %v988_v33 }
 0x281   :  { %v1180_v35 = vpop.f32.mrf.mxu0 }
 0x282   :  { %994 = vst [vmem:[%s1575_s6] sm:$0xff] %v989_v34 }
 0x283   :  { %v991_v36 = vpop.f32.mrf.mxu0 }
 0x285   :  { %v1181_v37 = vpop.f32.mrf.mxu0 }

</bundles_post_ra>
